<compile_context>
chip_gen: v7x
topology: tpu7x:2x2x1
jax: 0.10.0
libtpu: 0.0.40
codegen_flags: <defaults>
</compile_context>

<pallas_src>
import jax
import jax.numpy as jnp
from jax.experimental import pallas as pl
from jax.experimental.pallas import tpu as pltpu


def _round_up(x, m):
    return ((x + m - 1) // m) * m


def _pad2d(a, rows, cols):
    pr, pc = rows - a.shape[0], cols - a.shape[1]
    if pr or pc:
        a = jnp.pad(a, ((0, pr), (0, pc)))
    return a


def _hrc_kernel(a_ref, xw_ref, xr_ref, wl_ref, wg_ref, o_ref, acc_ref):
    # a_ref : (TM, TK)  bf16  A_hat tile (streamed / double-buffered)
    # xw_ref: (TK, F)   bf16  precomputed X@W k-tile (streamed)
    # xr_ref: (TM, F)   f32   X row tile (exact residual path)
    # wl_ref: (TM, 1)   f32   raw w_local row tile
    # wg_ref: (1, 1)    f32   raw w_global (SMEM scalar)
    # o_ref : (TM, F)   f32   output row tile (resident across the k axis)
    # acc_ref: (TM, F)  f32   scratch accumulator
    k = pl.program_id(1)

    @pl.when(k == 0)
    def _():
        acc_ref[...] = jnp.zeros_like(acc_ref)

    # Partial aggregation  A_tile @ XW_tile  on the MXU (bf16 in, f32 acc).
    acc_ref[...] += jnp.dot(a_ref[...], xw_ref[...],
                            preferred_element_type=jnp.float32)

    @pl.when(k == pl.num_programs(1) - 1)
    def _():
        # xi diagonal entries for this row tile (EUP sigmoid, f32 VPU math).
        g = jax.nn.sigmoid(wg_ref[0, 0])
        xi = g * jax.nn.sigmoid(wl_ref[...])                    # (TM, 1) f32
        agg = jnp.maximum(acc_ref[...], 0.0)                    # sigma = ReLU (f32)
        x = xr_ref[...]
        # xi @ agg + (I - xi) @ X with diagonal xi -> fused single multiply.
        o_ref[...] = xi * (agg - x) + x


def hierarchical_rc(X, A_hat, W, w_global, w_local, *, tm=None, tk=None):
    n, f = X.shape
    assert A_hat.shape == (n, n) and W.shape == (f, f)

    # Pad N and F to multiples of 128 (zero padding is exact for this op:
    # padded rows/cols contribute zero and are sliced off at the end).
    n_pad = _round_up(n, 128)
    f_pad = _round_up(f, 128)

    # Row-tile: prefer wide tiles (fewer grid steps, longer DMAs), but keep at
    # least ~4 row tiles so the pipeline / megacore sharding has work to split.
    if tm is None:
        tm = 128
        for cand in (512, 256):
            if n_pad % cand == 0 and n_pad // cand >= 4:
                tm = cand
                break
    assert n_pad % tm == 0 and tm % 8 == 0

    # K-tile of the A_hat contraction: largest multiple of 128 (<= 2048)
    # dividing n_pad.  Keeps VMEM O(tm*tk) independent of N.
    if tk is None:
        tk = 128
        t = min(n_pad, 2048)
        while t >= 128:
            if n_pad % t == 0:
                tk = t
                break
            t -= 128
    assert n_pad % tk == 0 and tk % 128 == 0

    x_pad = _pad2d(jnp.asarray(X, jnp.float32), n_pad, f_pad)
    w_pad = _pad2d(jnp.asarray(W, jnp.float32), f_pad, f_pad)
    a_pad = _pad2d(jnp.asarray(A_hat, jnp.float32), n_pad, n_pad)

    # Hoisted weight matmul: XW once in f32 (one fewer bf16 rounding stage than
    # the chained in-kernel version), cast to bf16 for the MXU stream.
    xw_bf16 = jnp.dot(x_pad, w_pad).astype(jnp.bfloat16)
    a_bf16 = a_pad.astype(jnp.bfloat16)

    wl = jnp.zeros((n_pad, 1), jnp.float32).at[:n, 0].set(
        jnp.asarray(w_local, jnp.float32).reshape(n))
    wg = jnp.asarray(w_global, jnp.float32).reshape(1, 1)

    num_row_tiles = n_pad // tm
    num_k_tiles = n_pad // tk

    # VMEM budget: double-buffered streams + output tile + accumulator scratch.
    vmem_needed = (
        2 * tm * tk * 2          # A_hat tile stream (bf16)
        + 2 * tk * f_pad * 2     # XW k-tile stream (bf16)
        + 2 * tm * f_pad * 4     # X f32 row-tile stream (residual)
        + 2 * tm * 1 * 4         # w_local tile
        + 2 * tm * f_pad * 4     # output tile
        + tm * f_pad * 4         # accumulator scratch
    )
    # Generation-aware cap: physical VMEM minus headroom for Mosaic scratch
    # (64 MiB/TC on v7x, 128 MiB on v5e/v6e).
    try:
        phys_vmem = int(pltpu.get_tpu_info().vmem_capacity_bytes)
    except Exception:  # pragma: no cover - conservative fallback
        phys_vmem = 64 << 20
    vmem_cap = max(phys_vmem - (8 << 20), 16 << 20)
    vmem_limit = int(min(max(vmem_needed + (4 << 20), 16 << 20), vmem_cap))

    cost = pl.CostEstimate(
        flops=2 * n_pad * n_pad * f_pad + 4 * n_pad * f_pad,
        transcendentals=n_pad + 1,
        bytes_accessed=(n_pad * n_pad * 2                       # A_hat stream
                        + num_row_tiles * n_pad * f_pad * 2     # XW re-streamed per row tile
                        + n_pad * f_pad * 4                     # X f32 residual
                        + n_pad * 4 + 4                         # w_local, w_global
                        + n_pad * f_pad * 4),                   # output
    )

    out_pad = pl.pallas_call(
        _hrc_kernel,
        out_shape=jax.ShapeDtypeStruct((n_pad, f_pad), jnp.float32),
        grid=(num_row_tiles, num_k_tiles),
        in_specs=[
            pl.BlockSpec((tm, tk), lambda i, k: (i, k)),              # A_hat tile
            pl.BlockSpec((tk, f_pad), lambda i, k: (k, 0)),           # XW k-tile
            pl.BlockSpec((tm, f_pad), lambda i, k: (i, 0)),           # X f32 row tile
            pl.BlockSpec((tm, 1), lambda i, k: (i, 0)),               # w_local tile
            pl.BlockSpec(memory_space=pltpu.MemorySpace.SMEM),        # w_global scalar
        ],
        out_specs=pl.BlockSpec((tm, f_pad), lambda i, k: (i, 0)),
        scratch_shapes=[pltpu.VMEM((tm, f_pad), jnp.float32)],
        compiler_params=pltpu.CompilerParams(
            dimension_semantics=("parallel", "arbitrary"),
            vmem_limit_bytes=vmem_limit,
        ),
        cost_estimate=cost,
    )(a_bf16, xw_bf16, x_pad, wl, wg)

    return out_pad[:n, :f]


def _reference(X, A_hat, W, w_global, w_local):
    n = X.shape[0]
    xi = jax.nn.sigmoid(w_global)[0] * jnp.diag(jax.nn.sigmoid(w_local))
    agg = xi @ jax.nn.relu(A_hat @ X @ W)
    res = (jnp.eye(n) - xi) @ X
    return agg + res


if __name__ == "__main__":
    key = jax.random.PRNGKey(0)

    def run_case(n_nodes, feat):
        ks = jax.random.split(jax.random.fold_in(key, n_nodes * 1000 + feat), 5)
        k_x, k_a, k_w, k_g, k_l = ks

        X = jax.random.normal(k_x, (n_nodes, feat), jnp.float32)
        # symmetric, row-normalized adjacency
        A = jax.random.uniform(k_a, (n_nodes, n_nodes), jnp.float32)
        A_hat = (A + A.T) * 0.5
        A_hat = A_hat / jnp.sum(A_hat, axis=1, keepdims=True)

        W = jax.random.normal(k_w, (feat, feat), jnp.float32) * 0.1
        w_global = jax.random.uniform(k_g, (1,), jnp.float32)
        w_local = jax.random.uniform(k_l, (n_nodes,), jnp.float32)

        out = jax.block_until_ready(
            hierarchical_rc(X, A_hat, W, w_global, w_local))
        ref = _reference(X, A_hat, W, w_global, w_local)

        assert out.shape == (n_nodes, feat)
        max_err = float(jnp.max(jnp.abs(out - ref)))
        # bf16 MXU inputs / f32 accumulation; residual path is exact f32.
        assert jnp.allclose(out, ref, atol=5e-3, rtol=5e-3), (
            f"case ({n_nodes},{feat}) mismatch vs reference (max abs err {max_err})")

    run_case(256, 128)   # aligned shapes: 2 row tiles x 1 k tile
    run_case(200, 96)    # ragged shapes: padded to (256, 128), sliced back
    print("KERNEL_OK")
</pallas_src>

<mosaic_0001>
module attributes {stable_mosaic.version = 11 : i64} {
  func.func @_hrc_kernel(%arg0: i32, %arg1: i32, %arg2: memref<128x256xbf16, #tpu.memory_space<vmem>>, %arg3: memref<256x128xbf16, #tpu.memory_space<vmem>>, %arg4: memref<128x128xf32, #tpu.memory_space<vmem>>, %arg5: memref<128x1xf32, #tpu.memory_space<vmem>>, %arg6: memref<1x1xf32, #tpu.memory_space<smem>>, %arg7: memref<128x128xf32, #tpu.memory_space<vmem>>, %arg8: memref<128x128xf32, #tpu.memory_space<vmem>>) attributes {dimension_semantics = [#tpu.dimension_semantics<parallel>, #tpu.dimension_semantics<arbitrary>], iteration_bounds = array<i64: 2, 1>, scalar_prefetch = 0 : i64, scratch_operands = 1 : i64, tpu.core_type = #tpu.core_type<tc>, window_params = [{transform_indices = @transform_0, window_bounds = array<i64: 128, 256>}, {transform_indices = @transform_1, window_bounds = array<i64: 256, 128>}, {transform_indices = @transform_2, window_bounds = array<i64: 128, 128>}, {transform_indices = @transform_3, window_bounds = array<i64: 128, 1>}, {transform_indices = @transform_4, window_bounds = array<i64: 1, 1>}, {transform_indices = @transform_5, window_bounds = array<i64: 128, 128>}]} {
    %c0_i32 = arith.constant 0 : i32
    %0 = arith.cmpi eq, %arg1, %c0_i32 : i32
    %1 = arith.extui %0 : i1 to i32
    %c0_i32_0 = arith.constant 0 : i32
    %2 = arith.cmpi ne, %1, %c0_i32_0 : i32
    scf.if %2 {
      %cst_10 = arith.constant 0.000000e+00 : f32
      %12 = vector.broadcast %cst_10 : f32 to vector<128x128xf32>
      %c0_11 = arith.constant 0 : index
      %c0_12 = arith.constant 0 : index
      %13 = vector.load %arg8[%c0_11, %c0_12] : memref<128x128xf32, #tpu.memory_space<vmem>>, vector<128x128xf32>
      tpu.vector_store %arg8[%c0_11, %c0_12], %12 {strides = array<i32>} : memref<128x128xf32, #tpu.memory_space<vmem>>, vector<128x128xf32>,
    } else {
    }
    %c0 = arith.constant 0 : index
    %c0_1 = arith.constant 0 : index
    %3 = vector.load %arg8[%c0, %c0_1] : memref<128x128xf32, #tpu.memory_space<vmem>>, vector<128x128xf32>
    %c0_2 = arith.constant 0 : index
    %c0_3 = arith.constant 0 : index
    %4 = vector.load %arg2[%c0_2, %c0_3] : memref<128x256xbf16, #tpu.memory_space<vmem>>, vector<128x256xbf16>
    %c0_4 = arith.constant 0 : index
    %c0_5 = arith.constant 0 : index
    %5 = vector.load %arg3[%c0_4, %c0_5] : memref<256x128xbf16, #tpu.memory_space<vmem>>, vector<256x128xbf16>
    %cst = arith.constant dense<0.000000e+00> : vector<128x128xf32>
    %6 = tpu.matmul %4, %5, %cst {dimension_numbers = #tpu.dot_dimension_numbers<[1], [0], [0], [1], [0, 0, 1, 1], [], []>} : vector<128x256xbf16>, vector<256x128xbf16>, vector<128x128xf32> -> vector<128x128xf32>
    %7 = arith.addf %3, %6 : vector<128x128xf32>
    %c0_6 = arith.constant 0 : index
    %c0_7 = arith.constant 0 : index
    %8 = vector.load %arg8[%c0_6, %c0_7] : memref<128x128xf32, #tpu.memory_space<vmem>>, vector<128x128xf32>
    tpu.vector_store %arg8[%c0_6, %c0_7], %7 {strides = array<i32>} : memref<128x128xf32, #tpu.memory_space<vmem>>, vector<128x128xf32>,
    %c0_i32_8 = arith.constant 0 : i32
    %9 = arith.cmpi eq, %arg1, %c0_i32_8 : i32
    %10 = arith.extui %9 : i1 to i32
    %c0_i32_9 = arith.constant 0 : i32
    %11 = arith.cmpi ne, %10, %c0_i32_9 : i32
    scf.if %11 {
      %c0_10 = arith.constant 0 : index
      %c0_11 = arith.constant 0 : index
      %12 = memref.load %arg6[%c0_10, %c0_11] : memref<1x1xf32, #tpu.memory_space<smem>>
      %13 = arith.negf %12 : f32
      %14 = math.exp %13 : f32
      %cst_12 = arith.constant 1.000000e+00 : f32
      %15 = arith.addf %cst_12, %14 : f32
      %16 = arith.divf %cst_12, %15 : f32
      %c0_13 = arith.constant 0 : index
      %c0_14 = arith.constant 0 : index
      %17 = vector.load %arg5[%c0_13, %c0_14] : memref<128x1xf32, #tpu.memory_space<vmem>>, vector<128x1xf32>
      %18 = arith.negf %17 : vector<128x1xf32>
      %19 = math.exp %18 : vector<128x1xf32>
      %cst_15 = arith.constant 1.000000e+00 : f32
      %20 = vector.broadcast %cst_15 : f32 to vector<128x1xf32>
      %21 = arith.addf %20, %19 : vector<128x1xf32>
      %22 = arith.divf %20, %21 : vector<128x1xf32>
      %23 = vector.broadcast %16 : f32 to vector<128x1xf32>
      %24 = arith.mulf %23, %22 : vector<128x1xf32>
      %c0_16 = arith.constant 0 : index
      %c0_17 = arith.constant 0 : index
      %25 = vector.load %arg8[%c0_16, %c0_17] : memref<128x128xf32, #tpu.memory_space<vmem>>, vector<128x128xf32>
      %cst_18 = arith.constant 0.000000e+00 : f32
      %26 = vector.broadcast %cst_18 : f32 to vector<128x128xf32>
      %27 = arith.maximumf %25, %26 : vector<128x128xf32>
      %c0_19 = arith.constant 0 : index
      %c0_20 = arith.constant 0 : index
      %28 = vector.load %arg4[%c0_19, %c0_20] : memref<128x128xf32, #tpu.memory_space<vmem>>, vector<128x128xf32>
      %29 = arith.subf %27, %28 : vector<128x128xf32>
      %30 = vector.broadcast %24 : vector<128x1xf32> to vector<128x128xf32>
      %31 = arith.mulf %30, %29 : vector<128x128xf32>
      %32 = arith.addf %31, %28 : vector<128x128xf32>
      %c0_21 = arith.constant 0 : index
      %c0_22 = arith.constant 0 : index
      %33 = vector.load %arg7[%c0_21, %c0_22] : memref<128x128xf32, #tpu.memory_space<vmem>>, vector<128x128xf32>
      tpu.vector_store %arg7[%c0_21, %c0_22], %32 {strides = array<i32>} : memref<128x128xf32, #tpu.memory_space<vmem>>, vector<128x128xf32>,
    } else {
    }
    return
  }
  func.func @transform_0(%arg0: i32, %arg1: i32) -> (i32, i32) {
    %c0_i32 = arith.constant 0 : i32
    return %arg0, %arg1 : i32, i32
  }
  func.func @transform_1(%arg0: i32, %arg1: i32) -> (i32, i32) {
    %c0_i32 = arith.constant 0 : i32
    %c0_i32_0 = arith.constant 0 : i32
    return %arg1, %c0_i32 : i32, i32
  }
  func.func @transform_2(%arg0: i32, %arg1: i32) -> (i32, i32) {
    %c0_i32 = arith.constant 0 : i32
    %c0_i32_0 = arith.constant 0 : i32
    return %arg0, %c0_i32 : i32, i32
  }
  func.func @transform_3(%arg0: i32, %arg1: i32) -> (i32, i32) {
    %c0_i32 = arith.constant 0 : i32
    %c0_i32_0 = arith.constant 0 : i32
    return %arg0, %c0_i32 : i32, i32
  }
  func.func @transform_4(%arg0: i32, %arg1: i32) -> (i32, i32) {
    %c0_i32 = arith.constant 0 : i32
    %c0_i32_0 = arith.constant 0 : i32
    %c0_i32_1 = arith.constant 0 : i32
    return %c0_i32, %c0_i32_0 : i32, i32
  }
  func.func @transform_5(%arg0: i32, %arg1: i32) -> (i32, i32) {
    %c0_i32 = arith.constant 0 : i32
    %c0_i32_0 = arith.constant 0 : i32
    return %arg0, %c0_i32 : i32, i32
  }
}

</mosaic_0001>

<bundles_post_ra>
// kernel: tpu_custom_call.1
= control target key start
LH: loop header
LB: loop body
LE: loop exit
PB: predicated region body
PF: predicated region fallthrough
CT: control target
= control target key end

     0   :  { %s2093_s0 = inlined_call_operand.vmem [shape: bf16[256,256], index: 0, kind: input, shape index: {}]   ;;  %s2094_s1 = inlined_call_operand.hbm [shape: bf16[256,128], index: 1, kind: input, shape index: {}]   ;;  %s2095_s2 = inlined_call_operand.hbm [shape: f32[256,128], index: 2, kind: input, shape index: {}]   ;;  %s2096_s3 = inlined_call_operand.vmem [shape: f32[256,1], index: 3, kind: input, shape index: {}]   ;;  %s2097_s4 = inlined_call_operand.<no memory space> [shape: f32[1,1], index: 4, kind: input, shape index: {}]   ;;  %s2098_s5 = inlined_call_operand.hbm [shape: f32[256,128], index: 5, kind: output, shape index: {}]  }
   0x1   :  { %10 = sst [smem:[#allocation3]] %s2097_s4 }
   0x2   :  { %11 = vsyncpa [#allocation5], 0 }
   0x3   :  { %12 = vsyncpa [#allocation8], 0 }
   0x4   :  { %14 = vsyncpa [#allocation8 + $0x1], 0 }
   0x5   :  { %15 = vsyncpa [#allocation6], 0 }
   0x6   :  { %17 = vsyncpa [#allocation6 + $0x1], 0  ;;  %s1744_s20 = smov 0   ;;  %s1746_s21 = smov 0  }
   0x7   :  { %s1748_s22 = smov 0   ;;  %s1750_s23 = smov 0  }
   0x8   :  { %s1752_s24 = smov 0   ;;  %s1754_s25 = smov 0  }
   0x9 LB: > { %s1208_s4 = sadd.s32 4294967295, %s1699_s25   ;;  %s1209_s26 = sadd.s32 4294967294, %s1699_s25   ;;  %s1699_s25 = sphi %s1754_s25, %s23_s25   ;;  %s1695_s24 = sphi %s1752_s24, %s2122_s24   ;;  %s1691_s23 = sphi %s1750_s23, %s2121_s23   ;;  %s1687_s22 = sphi %s1748_s22, %s2120_s22   ;;  %s1683_s21 = sphi %s1746_s21, %s2119_s21   ;;  %s1679_s20 = sphi %s1744_s20, %s2118_s20  }
   0xa   : > { %p109_p0 = scmp.ne.s32.totalorder %s1683_s21, %s1679_s20  ;;  %p1778_p1 = scmp.eq.s32.totalorder %s1208_s4, 0 }
   0xb   : > { %p1782_p2 = scmp.eq.s32.totalorder %s1208_s4, 1  ;;  %p186_p3 = scmp.eq.s32.totalorder %s1209_s26, 1 }
   0xc   : > { %s2103_s27 = scalar_select %p1778_p1, 1, 0 }
   0xd   : > { %s2104_s28 = scalar_select %p1782_p2, 1, 0 }
   0xe   : > { %p1788_p4 = por %p1778_p1, %p109_p0  ;;  %p1210_p5 = scmp.ge.s32.totalorder %s1699_s25, 1 }
   0xf   : > { %p1793_p6 = por %p186_p3, %p109_p0  ;;  %p193_p7 = scmp.lt.s32.totalorder %s1699_s25, 3 }
  0x10   : > { %s2105_s29 = scalar_select %p1788_p4, 1, 0 }
  0x11   : > { %s2106_s30 = scalar_select %p1793_p6, 1, 0 }
  0x12   : > { %p1798_p8 = pnand %p1210_p5, %p193_p7  ;;  %s1701_s7 = smov [#allocation4]  }
  0x13   : > { %s208_s8 = sshll.u32 %s1701_s7, 4  ;;  %s35_s10 = sadd.s32 1, %s1695_s24  ;;  %s209_s8 = int_to_ptr.vmem [resolvable:$true] %s208_s8 }
  0x14   : > { %s2107_s6 = scalar_select %p1798_p8, 1, 0 }
  0x15   : > { %p1373_p9 = pneg %p1798_p8  ;;  %s1555_s13 = scalar_lea.hbm %s2094_s1, 2048 }
  0x16   : > { %p1556_p12 = scmp.ne.s32.totalorder %s2094_s1, %s1555_s13  ;;  %p1562_p5 = scmp.lt.u32.totalorder %s1555_s13, %s2094_s1 }
  0x17   : > { %p1807_p11 = pnand %p1373_p9, %p1778_p1 }
  0x19   : > { %p1557_p13 = pneg %p1807_p11 }
  0x1b   : > { %p1558_p0 = pnand %p1557_p13, %p1556_p12 }
  0x1d   : > { %p1559_p3 = pneg %p1558_p0 }
  0x1f   : > { %p1564_p7 = pnand %p1562_p5, %p1559_p3 }
  0x21   : > { %1567 = shalt.err (!%p1564_p7)
}
  0x22   : > { %s1568_s18 = scalar_lea.vmem %s209_s8, 2048  ;;  %p1576_p4 = scmp.lt.s32.totalorder %s209_s8, %s209_s8 }
  0x23   : > { %p1569_p9 = scmp.ne.s32.totalorder %s209_s8, %s1568_s18  ;;  %p1577_p1 = scmp.lt.s32.totalorder %s1568_s18, %s1568_s18 }
  0x25   : > { %p1571_p10 = pnand %p1569_p9, %p1557_p13  ;;  %p1578_p8 = por %p1577_p1, %p1576_p4 }
  0x27   : > { %p1572_p6 = pneg %p1571_p10 }
  0x29   : > { %p1579_p2 = pnand %p1578_p8, %p1572_p6 }
  0x2b   : > { %1582 = shalt.err (!%p1579_p2)
}
  0x2c   : > { %s1702_s19 = smov 64   ;;  %s1703_s4 = smov 4  }
  0x2d   : > { %1376 = dma.hbm_to_vmem [thread:$0]  (!%p1807_p11), %s2094_s1, 2048, %s209_s8, [#allocation5], %s1702_s19, %s1702_s19, %s1703_s4  }
  0x2e   : > { %p37_p1 = scmp.ge.s32.totalorder %s35_s10, 2  ;;  %s96_s11 = sadd.s32 1, %s1687_s22 }
  0x2f   : > { %p103_p2 = scmp.ne.s32.totalorder %s1687_s22, %s1683_s21  ;;  %p104_p4 = scmp.eq.s32.totalorder %s1699_s25, 0 }
  0x30   : > { %s2124_s10 = smov (%p37_p1, %s35_s10), 0  ;;  %p2110_p8 = scmp.ne.s32.totalorder %s2104_s28, 0 }
  0x31   : > { %p1834_p6 = por %p104_p4, %p103_p2  ;;  %s93_s9 = ssub.s32 %s1695_s24, %s2124_s10 }
  0x32   : > { %p1840_p10 = por %p2110_p8, %p103_p2  ;;  %p1386_p12 = scmp.lt.s32.totalorder %s1699_s25, 2 }
  0x33   : > { %p94_p11 = scmp.eq.s32.totalorder %s93_s9, 0  ;;  %s240_s8 = sand.u32 1, %s1687_s22  }
  0x34   : > { %s1213_s14 = sshll.u32 %s240_s8, 7  ;;  %s1278_s16 = sshll.u32 %s1695_s24, 11 }
  0x35   : > { %s1849_s15 = scalar_select %p94_p11, %s1687_s22, %s96_s11  }
  0x36   : > { %s1855_s19 = scalar_lea.hbm %s2095_s2, %s1278_s16  ;;  %s244_s28 = scalar_lea.vmem [#allocation7], %s1213_s14 }
  0x37   : > { %s251_s4 = sshll.u32 %s244_s28, 4  ;;  %p1861_p13 = pnand %p1386_p12, %p1834_p6  ;;  %s1857_s4 = int_to_ptr.vmem [resolvable:$true] %s251_s4 }
  0x38   : > { %s1865_s7 = scalar_lea.sflag [#allocation8], %s240_s8  ;;  %s1583_s11 = scalar_lea.hbm %s1855_s19, 2048 }
  0x39   : > { %p1584_p0 = scmp.ne.s32.totalorder %s1855_s19, %s1583_s11  ;;  %p1585_p3 = pneg %p1861_p13 }
  0x3a   : > { %s1588_s12 = scalar_lea.hbm %s2095_s2, 4096  ;;  %p1589_p9 = scmp.lt.u32.totalorder %s1855_s19, %s2095_s2 }
  0x3b   : > { %p1586_p5 = pnand %p1585_p3, %p1584_p0  ;;  %p1590_p1 = scmp.lt.u32.totalorder %s1588_s12, %s1583_s11 }
  0x3c   : > { %p1592_p4 = scmp.lt.u32.totalorder %s1583_s11, %s1855_s19 }
  0x3d   : > { %p1587_p7 = pneg %p1586_p5  ;;  %p1591_p2 = por %p1590_p1, %p1589_p9 }
  0x3f   : > { %p1593_p6 = por %p1592_p4, %p1591_p2 }
  0x41   : > { %p1594_p8 = pnand %p1593_p6, %p1587_p7 }
  0x43   : > { %1597 = shalt.err (!%p1594_p8)
}
  0x44   : > { %s1598_s8 = scalar_lea.vmem %s1857_s4, 2048  ;;  %s1704_s18 = smov [#allocation7]  }
  0x45   : > { %p1599_p12 = scmp.ne.s32.totalorder %s1857_s4, %s1598_s8  ;;  %s1603_s28 = sshll.u32 %s1704_s18, 4  ;;  %s1604_s28 = int_to_ptr.vmem [resolvable:$false] %s1603_s28 }
  0x46   : > { %s1605_s9 = scalar_lea.vmem %s1604_s28, 4096  ;;  %p1606_p5 = scmp.lt.s32.totalorder %s1857_s4, %s1604_s28 }
  0x47   : > { %p1601_p11 = pnand %p1599_p12, %p1585_p3  ;;  %p1607_p9 = scmp.lt.s32.totalorder %s1605_s9, %s1598_s8 }
  0x49   : > { %p1602_p0 = pneg %p1601_p11  ;;  %p1608_p1 = por %p1607_p9, %p1606_p5 }
  0x4b   : > { %p1609_p2 = pnand %p1608_p1, %p1602_p0 }
  0x4d   : > { %1612 = shalt.err (!%p1609_p2)
}
  0x4e   : > { %s1705_s11 = smov 128   ;;  %s1706_s14 = smov 8  }
  0x4f   : > { %1380 = dma.hbm_to_vmem [thread:$0]  (!%p1861_p13), %s1855_s19, 2048, %s1857_s4, %s1865_s7, %s1705_s11, %s1705_s11, %s1706_s14  }
  0x50   : > { %p2113_p3 = scmp.ne.s32.totalorder %s2107_s6, 0 }
  0x51   : > { %p2114_p7 = scmp.ne.s32.totalorder (!%p2113_p3), %s2103_s27, 0 }
  0x52   : > { %272 = sbr.rel (%p2113_p3) target bundleno = 407 (0x197), region = 40 }
  0x59   : > { %1666 = dma.done.wait (%p2114_p7), [#allocation5], 2048  }
  0x5a   : > { %1668 = vsyncadd (%p2114_p7), [#allocation5], 4294965248  ;;  %s1900_s12 = sand.u32 1, %s1683_s21   ;;  %p2115_p13 = scmp.ne.s32.totalorder %s2105_s29, 0 }
  0x5b   : > { %s1218_s16 = sshll.u32 %s1900_s12, 7  ;;  %s279_s17 = scalar_lea.sflag [#allocation8], %s1900_s12 }
  0x5c   : > { %s1906_s19 = scalar_lea.vmem [#allocation7], %s1218_s16 }
  0x5d   : > { %1670 = dma.done.wait (%p2115_p13), %s279_s17, 2048  }
  0x5e   : > { %1672 = vsyncadd (%p2115_p13), %s279_s17, 4294965248  ;;  %s738_s27 = sld [smem:[#allocation3]]  ;;  %s1220_s6 = sshll.u32 %s1691_s23, 4  ;;  %v1447_v0 = vld [vmem:[#allocation4 + $0x40] sm:$0xff]   ;;  %v1449_v2 = vld [vmem:[#allocation4 + $0x48] sm:$0xff]   ;;  %v1707_v9 = vmov 0  }
  0x5f   : > { %p326_p4 = scmp.lt.s32.totalorder %s1220_s6, 31  ;;  %v1448_v1 = vld [vmem:[#allocation4] sm:$0xff]   ;;  %1281 = vmatprep.subr.bf16.mxu0 %v1447_v0  ;;  %1345 = vmatprep.subr.bf16.mxu1 %v1447_v0  ;;  %v1450_v3 = vld [vmem:[#allocation4 + $0x8] sm:$0xff]   ;;  %v1451_v4 = vld [vmem:[#allocation4 + $0x50] sm:$0xff]   ;;  %s1708_s7 = smov [#allocation9]  }
  0x60   : > { %1282 = vmatpush3.bf16.msra.mxu0 %v1448_v1  ;;  %1353 = vmatpush3.bf16.msra.mxu1 %v1448_v1  ;;  %v1452_v6 = vld [vmem:[#allocation4 + $0x10] sm:$0xff]   ;;  %v1453_v8 = vld [vmem:[#allocation4 + $0x58] sm:$0xff]   ;;  %v1455_v11 = vld [vmem:[#allocation4 + $0x60] sm:$0xff]  }
  0x61   : > { %1283 = vmatprep.subr.bf16.mxu0 %v1449_v2  ;;  %1346 = vmatprep.subr.bf16.mxu1 %v1449_v2  ;;  %s2126_s6 = smov (!%p326_p4, %s1220_s6), 31  ;;  %v1454_v10 = vld [vmem:[#allocation4 + $0x18] sm:$0xff]   ;;  %v1456_v12 = vld [vmem:[#allocation4 + $0x20] sm:$0xff]   ;;  %v1457_v13 = vld [vmem:[#allocation4 + $0x68] sm:$0xff]  }
  0x62   : > { %1446 = vset.pattern.permute.xlu1 %v1707_v9  ;;  %1445 = vset.pattern.permute.xlu0 %v1707_v9  ;;  %s1279_s29 = sshll.u32 %s2126_s6, 3  ;;  %v1458_v17 = vld [vmem:[#allocation4 + $0x28] sm:$0xff]   ;;  %v1459_v18 = vld [vmem:[#allocation4 + $0x70] sm:$0xff]   ;;  %v1461_v20 = vld [vmem:[#allocation4 + $0x78] sm:$0xff]  }
  0x63   : > { %s1921_s8 = scalar_lea.vmem %s2093_s0, %s1279_s29  ;;  %v1460_v19 = vld [vmem:[#allocation4 + $0x30] sm:$0xff]   ;;  %v1462_v21 = vld [vmem:[#allocation4 + $0x38] sm:$0xff]   ;;  %s1944_s14 = scalar_lea.vmem %s2096_s3, %s1279_s29 }
  0x64   : > { %s739_s4 = sxor.u32 2147483648, %s738_s27  ;;  %1284 = vmatpush3.bf16.msra.mxu0 %v1450_v3  ;;  %1354 = vmatpush3.bf16.msra.mxu1 %v1450_v3  ;;  %v1465_v14 = vld [vmem:[%s1921_s8 + $0x4] ss:$8 sps:$4 sm:$0xff]   ;;  %v1463_v22 = vld [vmem:[%s1921_s8] ss:$8 sps:$4 sm:$0xff]   ;;  %v750_v38 = vld [vmem:[%s1944_s14 + $0x10] sm:$0xff] }
  0x65   : > { %v740_v5 = vstv %s739_s4  ;;  %1285 = vmatprep.subr.bf16.mxu0 %v1451_v4  ;;  %1347 = vmatprep.subr.bf16.mxu1 %v1451_v4  ;;  %v1468_v15 = vld [vmem:[%s1921_s8 + $0x44] ss:$8 sps:$4 sm:$0xff]   ;;  %v1466_v23 = vld [vmem:[%s1921_s8 + $0x40] ss:$8 sps:$4 sm:$0xff]   ;;  %v1469_v24 = vld [vmem:[%s1921_s8 + $0x14] ss:$8 sps:$4 sm:$0xff]  }
  0x66   : > { %v741_v7 = vmul.f32 1.442695, %v740_v5  ;;  %638 = vmatprep.mubr.bf16.mxu0 %v1465_v14  ;;  %670 = vmatprep.mubr.bf16.mxu1 %v1468_v15  ;;  %v1472_v25 = vld [vmem:[%s1921_s8 + $0x54] ss:$8 sps:$4 sm:$0xff]   ;;  %v1471_v26 = vld [vmem:[%s1921_s8 + $0x10] ss:$8 sps:$4 sm:$0xff]  }
  0x67   : > { %v1474_v27 = vld [vmem:[%s1921_s8 + $0x50] ss:$8 sps:$4 sm:$0xff]   ;;  %v1475_v28 = vld [vmem:[%s1921_s8 + $0x24] ss:$8 sps:$4 sm:$0xff]   ;;  %v1477_v30 = vld [vmem:[%s1921_s8 + $0x20] ss:$8 sps:$4 sm:$0xff]  }
  0x68   : > { %1487 = vpow2.f32 %v741_v7  ;;  %1286 = vmatpush3.bf16.msra.mxu0 %v1452_v6  ;;  %1355 = vmatpush3.bf16.msra.mxu1 %v1452_v6  ;;  %v1478_v29 = vld [vmem:[%s1921_s8 + $0x64] ss:$8 sps:$4 sm:$0xff]   ;;  %v1480_v31 = vld [vmem:[%s1921_s8 + $0x60] ss:$8 sps:$4 sm:$0xff]   ;;  %v1481_v32 = vld [vmem:[%s1921_s8 + $0x34] ss:$8 sps:$4 sm:$0xff]  }
  0x69   : > { %1287 = vmatprep.subr.bf16.mxu0 %v1453_v8  ;;  %1348 = vmatprep.subr.bf16.mxu1 %v1453_v8  ;;  %v1484_v33 = vld [vmem:[%s1921_s8 + $0x74] ss:$8 sps:$4 sm:$0xff]   ;;  %v1483_v34 = vld [vmem:[%s1921_s8 + $0x30] ss:$8 sps:$4 sm:$0xff]   ;;  %v748_v39 = vld [vmem:[%s1944_s14] sm:$0xff]  ;;  %s2000_s27 = scalar_lea.vmem [#allocation9], %s1218_s16 }
  0x6a   : > { %v1486_v35 = vld [vmem:[%s1921_s8 + $0x70] ss:$8 sps:$4 sm:$0xff]   ;;  %v1259_v40 = vmul.f32 -1.442695, %v750_v38  ;;  %v1257_v41 = vmul.f32 -1.442695, %v748_v39 }
  0x6b   : > { %v751_v42 = vld [vmem:[%s1944_s14 + $0x18] sm:$0xff]  ;;  %v749_v43 = vld [vmem:[%s1944_s14 + $0x8] sm:$0xff]  ;;  %v752_v47 = vld [vmem:[%s1944_s14 + $0x20] sm:$0xff]  ;;  %s1280_s16 = sshll.u32 %s1691_s23, 11  ;;  %s1083_s6 = sshll.u32 %s2000_s27, 4  ;;  %s2042_s6 = int_to_ptr.vmem [resolvable:$true] %s1083_s6 }
  0x6c   : > { %1288 = vmatpush3.bf16.msra.mxu0 %v1454_v10  ;;  %1356 = vmatpush3.bf16.msra.mxu1 %v1454_v10  ;;  %v1260_v44 = vmul.f32 -1.442695, %v751_v42  ;;  %v753_v45 = vld [vmem:[%s1944_s14 + $0x28] sm:$0xff]  ;;  %v1258_v46 = vmul.f32 -1.442695, %v749_v43  ;;  %v755_v49 = vld [vmem:[%s1944_s14 + $0x38] sm:$0xff]  ;;  %s2040_s29 = scalar_lea.hbm %s2098_s5, %s1280_s16 }
  0x6d   : > { %1289 = vmatprep.subr.bf16.mxu0 %v1455_v11  ;;  %1349 = vmatprep.subr.bf16.mxu1 %v1455_v11  ;;  %v1262_v48 = vmul.f32 -1.442695, %v753_v45  ;;  %v1261_v50 = vmul.f32 -1.442695, %v752_v47  ;;  %v1264_v51 = vmul.f32 -1.442695, %v755_v49 }
  0x6e   : > { %v754_v52 = vld [vmem:[%s1944_s14 + $0x30] sm:$0xff]  ;;  %v757_v53 = vld [vmem:[%s1944_s14 + $0x48] sm:$0xff]  ;;  %v756_v55 = vld [vmem:[%s1944_s14 + $0x40] sm:$0xff]  ;;  %s1070_s23 = scalar_lea.sflag [#allocation6], %s1900_s12  ;;  %s1613_s26 = scalar_lea.vmem %s2042_s6, 2048 }
  0x6f   : > { %v1263_v54 = vmul.f32 -1.442695, %v754_v52  ;;  %v1266_v58 = vmul.f32 -1.442695, %v757_v53  ;;  %v1265_v59 = vmul.f32 -1.442695, %v756_v55  ;;  %p1614_p6 = scmp.ne.s32.totalorder %s2042_s6, %s1613_s26 }
  0x70   : > { %1290 = vmatpush3.bf16.msra.mxu0 %v1456_v12  ;;  %1357 = vmatpush3.bf16.msra.mxu1 %v1456_v12  ;;  %v759_v60 = vld [vmem:[%s1944_s14 + $0x58] sm:$0xff]  ;;  %v758_v62 = vld [vmem:[%s1944_s14 + $0x50] sm:$0xff]  ;;  %v761_v4 = vld [vmem:[%s1944_s14 + $0x68] sm:$0xff]  ;;  %s1617_s8 = sshll.u32 %s1708_s7, 4  ;;  %s1618_s8 = int_to_ptr.vmem [resolvable:$false] %s1617_s8 }
  0x71   : > { %1291 = vmatprep.subr.bf16.mxu0 %v1457_v13  ;;  %1350 = vmatprep.subr.bf16.mxu1 %v1457_v13  ;;  %v1268_v2 = vmul.f32 -1.442695, %v759_v60  ;;  %v1267_v3 = vmul.f32 -1.442695, %v758_v62  ;;  %v760_v8 = vld [vmem:[%s1944_s14 + $0x60] sm:$0xff]  ;;  %v763_v14 = vld [vmem:[%s1944_s14 + $0x78] sm:$0xff]  ;;  %p1615_p8 = pnand %p1614_p6, %p1840_p10  ;;  %p1620_p11 = scmp.lt.s32.totalorder %s2042_s6, %s1618_s8 }
  0x72   : > { %v1488_v16 = vpop.eup %1487  ;;  %v1270_v10 = vmul.f32 -1.442695, %v761_v4  ;;  %v1269_v13 = vmul.f32 -1.442695, %v760_v8 }
  0x73   : > { %1361 = vpush %v1488_v16  ;;  %v762_v16 = vld [vmem:[%s1944_s14 + $0x70] sm:$0xff]  ;;  %p1616_p12 = pneg %p1615_p8 }
  0x74   : > { %1292 = vmatpush3.bf16.msra.mxu0 %v1458_v17  ;;  %1358 = vmatpush3.bf16.msra.mxu1 %v1458_v17 }
  0x75   : > { %1293 = vmatprep.subr.bf16.mxu0 %v1459_v18  ;;  %1351 = vmatprep.subr.bf16.mxu1 %v1459_v18 }
  0x78   : > { %1294 = vmatpush3.bf16.msra.mxu0 %v1460_v19  ;;  %1359 = vmatpush3.bf16.msra.mxu1 %v1460_v19  ;;  %v1272_v19 = vmul.f32 -1.442695, %v763_v14 }
  0x79   : > { %1295 = vmatprep.subr.bf16.mxu0 %v1461_v20  ;;  %1352 = vmatprep.subr.bf16.mxu1 %v1461_v20 }
  0x7c   : > { %1296 = vmatpush3.bf16.msra.mxu0 %v1462_v21  ;;  %1360 = vmatpush3.bf16.msra.mxu1 %v1462_v21  ;;  %v1271_v21 = vmul.f32 -1.442695, %v762_v16 }
  0x7f   : > { %639 = vmatmul.mubr.bf16.vlgmr.msra.gmra.mrb[0].mxu0 %v1463_v22  ;;  %671 = vmatmul.mubr.bf16.vlgmr.msra.gmra.mrb[0].mxu1 %v1466_v23 }
  0x80   : > { %646 = vmatprep.mubr.bf16.mxu0 %v1469_v24  ;;  %678 = vmatprep.mubr.bf16.mxu1 %v1472_v25 }
  0x87   : > { %647 = vmatmul.mubr.bf16.gmra.mrb[4].mxu0 %v1471_v26  ;;  %679 = vmatmul.mubr.bf16.gmra.mrb[4].mxu1 %v1474_v27 }
  0x88   : > { %654 = vmatprep.mubr.bf16.mxu0 %v1475_v28  ;;  %686 = vmatprep.mubr.bf16.mxu1 %v1478_v29 }
  0x8f   : > { %655 = vmatmul.mubr.bf16.gmra.mrb[8].mxu0 %v1477_v30  ;;  %687 = vmatmul.mubr.bf16.gmra.mrb[8].mxu1 %v1480_v31 }
  0x90   : > { %662 = vmatprep.mubr.bf16.mxu0 %v1481_v32  ;;  %694 = vmatprep.mubr.bf16.mxu1 %v1484_v33 }
  0x97   : > { %663 = vmatmul.mubr.bf16.gmra.mrb[12].mxu0 %v1483_v34  ;;  %695 = vmatmul.mubr.bf16.gmra.mrb[12].mxu1 %v1486_v35 }
  0xa4   : > { %s1362_s18 = spop %1361 }
  0xa5   : > { %s744_s28 = sadd.f32 1.0, %s1362_s18  ;;  %s1619_s18 = scalar_lea.vmem %s1618_s8, 4096 }
  0xa6   : > { %p1621_p0 = scmp.lt.s32.totalorder %s1619_s18, %s1613_s26 }
  0xa7   : > { %v745_v36 = vstv %s744_s28 }
  0xa8   : > { %1489 = vrcp.f32 %v745_v36  ;;  %p1622_p5 = por %p1621_p0, %p1620_p11 }
  0xa9   : > { %1491 = vpow2.f32 %v1259_v40 }
  0xaa   : > { %1493 = vpow2.f32 %v1257_v41  ;;  %p1623_p9 = pnand %p1622_p5, %p1616_p12 }
  0xab   : > { %1495 = vpow2.f32 %v1260_v44 }
  0xac   : > { %1497 = vpow2.f32 %v1258_v46 }
  0xad   : > { %1499 = vpow2.f32 %v1262_v48 }
  0xae   : > { %1501 = vpow2.f32 %v1261_v50 }
  0xaf   : > { %1503 = vpow2.f32 %v1264_v51 }
  0xb0   : > { %1505 = vpow2.f32 %v1263_v54 }
  0xb1   : > { %1507 = vpow2.f32 %v1266_v58 }
  0xb2   : > { %v1490_v37 = vpop.eup %1489  ;;  %1509 = vpow2.f32 %v1265_v59 }
  0xb3   : > { %1363 = vpush %v1490_v37  ;;  %v1492_v56 = vpop.eup %1491 }
  0xb4   : > { %v1494_v57 = vpop.eup %1493  ;;  %v814_v61 = vadd.f32 1.0, %v1492_v56 }
  0xb5   : > { %v1496_v63 = vpop.eup %1495  ;;  %v812_v0 = vadd.f32 1.0, %v1494_v57 }
  0xb6   : > { %v1498_v1 = vpop.eup %1497  ;;  %1511 = vrcp.f32 %v814_v61  ;;  %v815_v6 = vadd.f32 1.0, %v1496_v63 }
  0xb7   : > { %v1500_v5 = vpop.eup %1499  ;;  %1513 = vrcp.f32 %v812_v0  ;;  %v813_v7 = vadd.f32 1.0, %v1498_v1 }
  0xb8   : > { %v1502_v9 = vpop.eup %1501  ;;  %1515 = vpow2.f32 %v1268_v2  ;;  %v817_v12 = vadd.f32 1.0, %v1500_v5 }
  0xb9   : > { %v1504_v11 = vpop.eup %1503  ;;  %1517 = vpow2.f32 %v1267_v3  ;;  %v816_v15 = vadd.f32 1.0, %v1502_v9 }
  0xba   : > { %1519 = vrcp.f32 %v815_v6  ;;  %v1506_v17 = vpop.eup %1505  ;;  %v819_v18 = vadd.f32 1.0, %v1504_v11 }
  0xbb   : > { %1521 = vrcp.f32 %v813_v7  ;;  %v1508_v20 = vpop.eup %1507  ;;  %v818_v23 = vadd.f32 1.0, %v1506_v17 }
  0xbc   : > { %1523 = vpow2.f32 %v1270_v10  ;;  %v1510_v22 = vpop.eup %1509  ;;  %v821_v27 = vadd.f32 1.0, %v1508_v20 }
  0xbd   : > { %1525 = vrcp.f32 %v817_v12  ;;  %v820_v30 = vadd.f32 1.0, %v1510_v22 }
  0xbe   : > { %1527 = vpow2.f32 %v1269_v13 }
  0xbf   : > { %1529 = vrcp.f32 %v816_v15 }
  0xc0   : > { %v1512_v24 = vpop.eup %1511  ;;  %1531 = vrcp.f32 %v819_v18 }
  0xc1   : > { %v1514_v25 = vpop.eup %1513  ;;  %1533 = vpow2.f32 %v1272_v19 }
  0xc2   : > { %v1516_v26 = vpop.eup %1515  ;;  %1535 = vpow2.f32 %v1271_v21 }
  0xc3   : > { %v1518_v28 = vpop.eup %1517  ;;  %1537 = vrcp.f32 %v818_v23  ;;  %v823_v36 = vadd.f32 1.0, %v1516_v26 }
  0xc4   : > { %v1520_v31 = vpop.eup %1519  ;;  %1539 = vrcp.f32 %v821_v27  ;;  %v822_v38 = vadd.f32 1.0, %v1518_v28 }
  0xc5   : > { %v1522_v34 = vpop.eup %1521  ;;  %1541 = vrcp.f32 %v820_v30 }
  0xc6   : > { %v1524_v35 = vpop.eup %1523  ;;  %1543 = vrcp.f32 %v823_v36 }
  0xc7   : > { %v1526_v37 = vpop.eup %1525  ;;  %v825_v44 = vadd.f32 1.0, %v1524_v35  ;;  %1545 = vrcp.f32 %v822_v38 }
  0xc8   : > { %v1528_v39 = vpop.eup %1527 }
  0xc9   : > { %v1530_v42 = vpop.eup %1529  ;;  %v824_v46 = vadd.f32 1.0, %v1528_v39  ;;  %1547 = vrcp.f32 %v825_v44 }
  0xca   : > { %v1532_v43 = vpop.eup %1531 }
  0xcb   : > { %v1534_v45 = vpop.eup %1533  ;;  %1549 = vrcp.f32 %v824_v46 }
  0xcc   : > { %v1536_v47 = vpop.eup %1535  ;;  %v827_v51 = vadd.f32 1.0, %v1534_v45 }
  0xcd   : > { %v1538_v50 = vpop.eup %1537  ;;  %v826_v52 = vadd.f32 1.0, %v1536_v47 }
  0xce   : > { %v1540_v53 = vpop.eup %1539  ;;  %1551 = vrcp.f32 %v827_v51 }
  0xcf   : > { %v1542_v56 = vpop.eup %1541  ;;  %1553 = vrcp.f32 %v826_v52 }
  0xd0   : > { %v1544_v57 = vpop.eup %1543 }
  0xd1   : > { %v1546_v60 = vpop.eup %1545 }
  0xd3   : > { %v1548_v61 = vpop.eup %1547 }
  0xd5   : > { %v1550_v0 = vpop.eup %1549 }
  0xd8   : > { %v1552_v1 = vpop.eup %1551 }
  0xd9   : > { %v1554_v4 = vpop.eup %1553 }
  0xe4   : > { %s1364_s17 = spop %1363 }
  0xe5   : > { %v1962_v29 = vstv %s1364_s17 }
  0xe6   : > { %v863_v32 = vmul.f32 %v1512_v24, %v1962_v29  ;;  %v861_v33 = vmul.f32 %v1514_v25, %v1962_v29  ;;  %v864_v40 = vmul.f32 %v1520_v31, %v1962_v29  ;;  %v862_v41 = vmul.f32 %v1522_v34, %v1962_v29  ;;  %v909_v34 = vld [vmem:[%s1906_s19] sm:$0xff] }
  0xe7   : > { %v866_v48 = vmul.f32 %v1526_v37, %v1962_v29  ;;  %v865_v49 = vmul.f32 %v1530_v42, %v1962_v29  ;;  %v868_v54 = vmul.f32 %v1532_v43, %v1962_v29  ;;  %v867_v55 = vmul.f32 %v1538_v50, %v1962_v29  ;;  %v910_v50 = vld [vmem:[%s1906_s19 + $0x8] sm:$0xff] }
  0xe8   : > { %953 = vperm.xlu1 %1446, %v863_v32   ;;  %943 = vperm.xlu0 %1445, %v861_v33   ;;  %v870_v58 = vmul.f32 %v1540_v53, %v1962_v29  ;;  %v869_v59 = vmul.f32 %v1542_v56, %v1962_v29  ;;  %v872_v62 = vmul.f32 %v1544_v57, %v1962_v29  ;;  %v911_v33 = vld [vmem:[%s1906_s19 + $0x10] sm:$0xff] }
  0xe9   : > { %v871_v63 = vmul.f32 %v1546_v60, %v1962_v29  ;;  %v874_v2 = vmul.f32 %v1548_v61, %v1962_v29  ;;  %v873_v3 = vmul.f32 %v1550_v0, %v1962_v29  ;;  %v876_v5 = vmul.f32 %v1552_v1, %v1962_v29 }
  0xea   : > { %v875_v6 = vmul.f32 %v1554_v4, %v1962_v29 }
  0xec   : > { %958 = vperm.xlu1 %1446, %v864_v40   ;;  %948 = vperm.xlu0 %1445, %v862_v41   ;;  %v912_v40 = vld [vmem:[%s1906_s19 + $0x18] sm:$0xff] }
  0xf0   : > { %968 = vperm.xlu1 %1446, %v866_v48   ;;  %963 = vperm.xlu0 %1445, %v865_v49  }
  0xf4   : > { %978 = vperm.xlu1 %1446, %v868_v54   ;;  %973 = vperm.xlu0 %1445, %v867_v55  }
  0xf8   : > { %988 = vperm.xlu1 %1446, %v870_v58   ;;  %983 = vperm.xlu0 %1445, %v869_v59   ;;  %v913_v58 = vld [vmem:[%s1906_s19 + $0x20] sm:$0xff] }
  0xfc   : > { %998 = vperm.xlu1 %1446, %v872_v62   ;;  %993 = vperm.xlu0 %1445, %v871_v63   ;;  %v914_v63 = vld [vmem:[%s1906_s19 + $0x28] sm:$0xff] }
 0x100   : > { %1008 = vperm.xlu1 %1446, %v874_v2   ;;  %1003 = vperm.xlu0 %1445, %v873_v3  }
 0x104   : > { %1018 = vperm.xlu1 %1446, %v876_v5   ;;  %1013 = vperm.xlu0 %1445, %v875_v6  }
 0x152   : > { %v1297_v7 = vpop.f32.mrb[0].mxu0  ;;  %v1321_v8 = vpop.f32.mrb[0].mxu1 }
 0x153   : > { %v1298_v9 = vpop.f32.mrb[1].mxu0  ;;  %v1322_v10 = vpop.f32.mrb[1].mxu1 }
 0x154   : > { %v1299_v11 = vadd.f32 %v1298_v9, %v1297_v7  ;;  %v1300_v12 = vpop.f32.mrb[2].mxu0  ;;  %v1980_v13 = vadd.f32 %v1322_v10, %v1321_v8  ;;  %v1324_v14 = vpop.f32.mrb[2].mxu1 }
 0x155   : > { %v1301_v15 = vpop.f32.mrb[3].mxu0  ;;  %v1325_v16 = vpop.f32.mrb[3].mxu1 }
 0x156   : > { %v1302_v17 = vadd.f32 %v1301_v15, %v1300_v12  ;;  %v1982_v18 = vadd.f32 %v1325_v16, %v1324_v14  ;;  %v893_v29 = vmax.f32 %v1299_v11, 0.0 }
 0x158   : > { %v925_v37 = vsub.f32 %v893_v29, %v909_v34  ;;  %v894_v43 = vmax.f32 %v1302_v17, 0.0 }
 0x15a   : > { %v1303_v19 = vpop.f32.mrb[4].mxu0  ;;  %v1327_v20 = vpop.f32.mrb[4].mxu1  ;;  %v926_v62 = vsub.f32 %v894_v43, %v910_v50 }
 0x15b   : > { %v1304_v21 = vpop.f32.mrb[5].mxu0  ;;  %v1328_v22 = vpop.f32.mrb[5].mxu1 }
 0x15c   : > { %v1305_v23 = vadd.f32 %v1304_v21, %v1303_v19  ;;  %v1306_v24 = vpop.f32.mrb[6].mxu0  ;;  %v1984_v25 = vadd.f32 %v1328_v22, %v1327_v20  ;;  %v1330_v26 = vpop.f32.mrb[6].mxu1  ;;  %v915_v21 = vld [vmem:[%s1906_s19 + $0x30] sm:$0xff] }
 0x15d   : > { %v1307_v27 = vpop.f32.mrb[7].mxu0  ;;  %v1331_v28 = vpop.f32.mrb[7].mxu1 }
 0x15e   : > { %v895_v30 = vmax.f32 %v1305_v23, 0.0  ;;  %v1308_v31 = vadd.f32 %v1307_v27, %v1306_v24  ;;  %v1986_v32 = vadd.f32 %v1331_v28, %v1330_v26  ;;  %v901_v28 = vmax.f32 %v1980_v13, 0.0 }
 0x160   : > { %v896_v35 = vmax.f32 %v1308_v31, 0.0  ;;  %v927_v36 = vsub.f32 %v895_v30, %v911_v33  ;;  %v902_v31 = vmax.f32 %v1982_v18, 0.0  ;;  %v904_v18 = vmax.f32 %v1986_v32, 0.0 }
 0x162   : > { %v1309_v38 = vpop.f32.mrb[8].mxu0  ;;  %v1333_v39 = vpop.f32.mrb[8].mxu1  ;;  %v928_v53 = vsub.f32 %v896_v35, %v912_v40 }
 0x163   : > { %v1310_v41 = vpop.f32.mrb[9].mxu0  ;;  %v1334_v42 = vpop.f32.mrb[9].mxu1 }
 0x164   : > { %v1311_v44 = vadd.f32 %v1310_v41, %v1309_v38  ;;  %v1312_v45 = vpop.f32.mrb[10].mxu0  ;;  %v1991_v46 = vadd.f32 %v1334_v42, %v1333_v39  ;;  %v1336_v47 = vpop.f32.mrb[10].mxu1  ;;  %v918_v41 = vld [vmem:[%s1906_s19 + $0x48] sm:$0xff] }
 0x165   : > { %v1313_v55 = vpop.f32.mrb[11].mxu0  ;;  %v1337_v56 = vpop.f32.mrb[11].mxu1 }
 0x166   : > { %v897_v54 = vmax.f32 %v1311_v44, 0.0  ;;  %v1314_v57 = vadd.f32 %v1313_v55, %v1312_v45  ;;  %v1995_v59 = vadd.f32 %v1337_v56, %v1336_v47  ;;  %v903_v44 = vmax.f32 %v1984_v25, 0.0 }
 0x167   : > { %v954_v48 = vpop.permute.xlu1 %953  ;;  %v944_v49 = vpop.permute.xlu0 %943  ;;  %v934_v47 = vsub.f32 %v902_v31, %v918_v41  ;;  %v905_v55 = vmax.f32 %v1991_v46, 0.0 }
 0x168   : > { %v1023_v51 = vmul.f32 %v954_v48, %v927_v36  ;;  %v1021_v52 = vmul.f32 %v944_v49, %v925_v37  ;;  %v898_v2 = vmax.f32 %v1314_v57, 0.0  ;;  %v929_v5 = vsub.f32 %v897_v54, %v913_v58  ;;  %v916_v36 = vld [vmem:[%s1906_s19 + $0x38] sm:$0xff]  ;;  %v917_v37 = vld [vmem:[%s1906_s19 + $0x40] sm:$0xff] }
 0x169   : > { %v933_v43 = vsub.f32 %v901_v28, %v917_v37  ;;  %v906_v25 = vmax.f32 %v1995_v59, 0.0 }
 0x16a   : > { %v1039_v60 = vadd.f32 %v1023_v51, %v911_v33  ;;  %v1037_v61 = vadd.f32 %v1021_v52, %v909_v34  ;;  %v1315_v6 = vpop.f32.mrb[12].mxu0  ;;  %v1339_v7 = vpop.f32.mrb[12].mxu1  ;;  %v930_v8 = vsub.f32 %v898_v2, %v914_v63  ;;  %v920_v51 = vld [vmem:[%s1906_s19 + $0x58] sm:$0xff]  ;;  %v919_v52 = vld [vmem:[%s1906_s19 + $0x50] sm:$0xff] }
 0x16b   : > { %v959_v0 = vpop.permute.xlu1 %958  ;;  %v949_v1 = vpop.permute.xlu0 %948 }
 0x16c   : > { %1055 = vst [vmem:[%s2000_s27 + $0x10] sm:$0xff] %v1039_v60  ;;  %1053 = vst [vmem:[%s2000_s27] sm:$0xff] %v1037_v61  ;;  %v1024_v3 = vmul.f32 %v959_v0, %v928_v53  ;;  %v1022_v4 = vmul.f32 %v949_v1, %v926_v62  ;;  %v1316_v9 = vpop.f32.mrb[13].mxu0  ;;  %v1340_v10 = vpop.f32.mrb[13].mxu1  ;;  %v935_v60 = vsub.f32 %v903_v44, %v919_v52  ;;  %v922_v61 = vld [vmem:[%s1906_s19 + $0x68] sm:$0xff]  ;;  %v921_v62 = vld [vmem:[%s1906_s19 + $0x60] sm:$0xff] }
 0x16d   : > { %v1317_v14 = vadd.f32 %v1316_v9, %v1315_v6  ;;  %v1318_v15 = vpop.f32.mrb[14].mxu0  ;;  %v2004_v16 = vadd.f32 %v1340_v10, %v1339_v7  ;;  %v1342_v17 = vpop.f32.mrb[14].mxu1  ;;  %v938_v2 = vsub.f32 %v906_v25, %v922_v61  ;;  %v937_v59 = vsub.f32 %v905_v55, %v921_v62  ;;  %v924_v9 = vld [vmem:[%s1906_s19 + $0x78] sm:$0xff]  ;;  %v923_v10 = vld [vmem:[%s1906_s19 + $0x70] sm:$0xff] }
 0x16e   : > { %v1040_v11 = vadd.f32 %v1024_v3, %v912_v40  ;;  %v1038_v12 = vadd.f32 %v1022_v4, %v910_v50  ;;  %v1319_v26 = vpop.f32.mrb[15].mxu0  ;;  %v1343_v27 = vpop.f32.mrb[15].mxu1 }
 0x16f   : > { %v969_v19 = vpop.permute.xlu1 %968  ;;  %v964_v20 = vpop.permute.xlu0 %963  ;;  %v899_v24 = vmax.f32 %v1317_v14, 0.0  ;;  %v1320_v29 = vadd.f32 %v1319_v26, %v1318_v15  ;;  %v1344_v30 = vadd.f32 %v1343_v27, %v1342_v17  ;;  %v907_v3 = vmax.f32 %v2004_v16, 0.0 }
 0x170   : > { %1056 = vst [vmem:[%s2000_s27 + $0x18] sm:$0xff] %v1040_v11  ;;  %1054 = vst [vmem:[%s2000_s27 + $0x8] sm:$0xff] %v1038_v12  ;;  %v1026_v22 = vmul.f32 %v969_v19, %v930_v8  ;;  %v1025_v23 = vmul.f32 %v964_v20, %v929_v5 }
 0x171   : > { %v931_v35 = vsub.f32 %v899_v24, %v915_v21  ;;  %v900_v40 = vmax.f32 %v1320_v29, 0.0  ;;  %v908_v4 = vmax.f32 %v1344_v30, 0.0  ;;  %v939_v17 = vsub.f32 %v907_v3, %v923_v10 }
 0x172   : > { %v1042_v33 = vadd.f32 %v1026_v22, %v914_v63  ;;  %v1041_v34 = vadd.f32 %v1025_v23, %v913_v58  ;;  %v936_v58 = vsub.f32 %v904_v18, %v920_v51 }
 0x173   : > { %v979_v38 = vpop.permute.xlu1 %978  ;;  %v974_v39 = vpop.permute.xlu0 %973  ;;  %v932_v13 = vsub.f32 %v900_v40, %v916_v36  ;;  %v940_v16 = vsub.f32 %v908_v4, %v924_v9 }
 0x174   : > { %1058 = vst [vmem:[%s2000_s27 + $0x28] sm:$0xff] %v1042_v33  ;;  %1057 = vst [vmem:[%s2000_s27 + $0x20] sm:$0xff] %v1041_v34  ;;  %v1027_v42 = vmul.f32 %v974_v39, %v931_v35 }
 0x175   : > { %v1028_v48 = vmul.f32 %v979_v38, %v932_v13 }
 0x176   : > { %v1043_v45 = vadd.f32 %v1027_v42, %v915_v21 }
 0x177   : > { %v989_v49 = vpop.permute.xlu1 %988  ;;  %v984_v50 = vpop.permute.xlu0 %983  ;;  %v1044_v32 = vadd.f32 %v1028_v48, %v916_v36 }
 0x178   : > { %1059 = vst [vmem:[%s2000_s27 + $0x30] sm:$0xff] %v1043_v45  ;;  %v1030_v53 = vmul.f32 %v989_v49, %v934_v47  ;;  %v1029_v54 = vmul.f32 %v984_v50, %v933_v43 }
 0x179   : > { %1060 = vst [vmem:[%s2000_s27 + $0x38] sm:$0xff] %v1044_v32 }
 0x17a   : > { %v1046_v56 = vadd.f32 %v1030_v53, %v918_v41  ;;  %v1045_v57 = vadd.f32 %v1029_v54, %v917_v37 }
 0x17b   : > { %v999_v63 = vpop.permute.xlu1 %998  ;;  %v994_v0 = vpop.permute.xlu0 %993 }
 0x17c   : > { %1062 = vst [vmem:[%s2000_s27 + $0x48] sm:$0xff] %v1046_v56  ;;  %1061 = vst [vmem:[%s2000_s27 + $0x40] sm:$0xff] %v1045_v57  ;;  %v1032_v1 = vmul.f32 %v999_v63, %v936_v58  ;;  %v1031_v46 = vmul.f32 %v994_v0, %v935_v60 }
 0x17e   : > { %v1048_v5 = vadd.f32 %v1032_v1, %v920_v51  ;;  %v1047_v6 = vadd.f32 %v1031_v46, %v919_v52 }
 0x17f   : > { %v1009_v7 = vpop.permute.xlu1 %1008  ;;  %v1004_v8 = vpop.permute.xlu0 %1003 }
 0x180   : > { %1064 = vst [vmem:[%s2000_s27 + $0x58] sm:$0xff] %v1048_v5  ;;  %1063 = vst [vmem:[%s2000_s27 + $0x50] sm:$0xff] %v1047_v6  ;;  %v1034_v11 = vmul.f32 %v1009_v7, %v938_v2  ;;  %v1033_v12 = vmul.f32 %v1004_v8, %v937_v59 }
 0x182   : > { %v1050_v14 = vadd.f32 %v1034_v11, %v922_v61  ;;  %v1049_v15 = vadd.f32 %v1033_v12, %v921_v62 }
 0x183   : > { %v1019_v19 = vpop.permute.xlu1 %1018  ;;  %v1014_v20 = vpop.permute.xlu0 %1013 }
 0x184   : > { %1066 = vst [vmem:[%s2000_s27 + $0x68] sm:$0xff] %v1050_v14  ;;  %1065 = vst [vmem:[%s2000_s27 + $0x60] sm:$0xff] %v1049_v15  ;;  %v1036_v21 = vmul.f32 %v1019_v19, %v940_v16  ;;  %v1035_v22 = vmul.f32 %v1014_v20, %v939_v17 }
 0x186   : > { %v1052_v23 = vadd.f32 %v1036_v21, %v924_v9  ;;  %v1051_v24 = vadd.f32 %v1035_v22, %v923_v10 }
 0x188   : > { %1068 = vst [vmem:[%s2000_s27 + $0x78] sm:$0xff] %v1052_v23  ;;  %1067 = vst [vmem:[%s2000_s27 + $0x70] sm:$0xff] %v1051_v24 }
 0x189   : > { %1626 = shalt.err (!%p1623_p9)
}
 0x18a   : > { %s1627_s28 = scalar_lea.hbm %s2040_s29, 2048  ;;  %s1631_s14 = scalar_lea.hbm %s2098_s5, 4096 }
 0x18b   : > { %p1628_p1 = scmp.ne.s32.totalorder %s2040_s29, %s1627_s28  ;;  %p1632_p7 = scmp.lt.u32.totalorder %s2040_s29, %s2098_s5 }
 0x18c   : > { %p1633_p13 = scmp.lt.u32.totalorder %s1631_s14, %s1627_s28  ;;  %p1635_p6 = scmp.lt.u32.totalorder %s1627_s28, %s2040_s29 }
 0x18d   : > { %p1629_p2 = pnand %p1628_p1, %p1840_p10 }
 0x18e   : > { %p1634_p4 = por %p1633_p13, %p1632_p7 }
 0x18f   : > { %p1630_p3 = pneg %p1629_p2 }
 0x190   : > { %p1636_p8 = por %p1635_p6, %p1634_p4 }
 0x192   : > { %p1637_p12 = pnand %p1636_p8, %p1630_p3 }
 0x194   : > { %1640 = shalt.err (!%p1637_p12)
}
 0x195   : > { %s1709_s16 = smov 128   ;;  %s1710_s19 = smov 8  }
 0x196   : > { %1371 = dma.vmem_to_hbm [thread:$0]  (%p1840_p10), %s2042_s6, 2048, %s2040_s29, %s1070_s23, %s1709_s16, %s1709_s16, %s1710_s19  }
 0x197 PF: > { %s1098_s4 = sand.u32 1, %s1679_s20   ;;  %p2116_p11 = scmp.ne.s32.totalorder %s2106_s30, 0 }
 0x198   : > { %p2117_p0 = scmp.ge.s32.totalorder %s1699_s25, 2  ;;  %s1099_s26 = scalar_lea.sflag [#allocation6], %s1098_s4 }
 0x19a   : > { %p1382_p5 = pnand %p2117_p0, %p2116_p11 }
 0x19c   : > { %1674 = dma.done.wait (!%p1382_p5), %s1099_s26, 2048  }
 0x19d   : > { %1676 = vsyncadd (!%p1382_p5), %s1099_s26, 4294965248  ;;  %s23_s25 = sadd.s32 1, %s1699_s25   ;;  %s2118_s20 = smov %s1683_s21 }
 0x19e   : > { %p20_p9 = scmp.ge.s32.totalorder %s23_s25, 4   ;;  %s2119_s21 = smov %s1687_s22 }
 0x19f   : > { %s2120_s22 = smov %s1849_s15  ;;  %s2121_s23 = smov %s1695_s24 }
 0x1a0   : > { %s2122_s24 = smov %s2124_s10  ;;  %22 = sbr.rel (!%p20_p9) target bundleno = 9 (0x9), region = 105 }
 0x1a7   :  { %1104 = vsyncpa [#allocation5], 1 }
 0x1a8   :  { %1106 = vsyncpa [#allocation5 + $0x1], 1 }
 0x1a9   :  { %1107 = vsyncpa [#allocation8], 1 }
 0x1aa   :  { %1109 = vsyncpa [#allocation8 + $0x1], 1 }
 0x1ab   :  { %1110 = vsyncpa [#allocation6], 1 }
 0x1ac   :  { %1112 = vsyncpa [#allocation6 + $0x1], 1 }

</bundles_post_ra>
